<compile_context>
chip_gen: v6e
topology: v6e:2x2x1
jax: 0.10.0
libtpu: 0.0.40
codegen_flags: <defaults>
</compile_context>

<pallas_src>
import functools

import jax
import jax.numpy as jnp
from jax.experimental import pallas as pl
from jax.experimental.pallas import tpu as pltpu


def _round_up(x, m):
    return ((x + m - 1) // m) * m


def _cnn_kernel(x_ref, w_ref, b_ref, o_ref, *, tile_b, l_pad):
    """One grid step: conv-as-matmul + global max pool for a tile of batches.

    x_ref : (TB * Lp, Kp)  im2col rows, bf16
    w_ref : (Kp, Cp)       flattened conv weight (in, out), bf16
    b_ref : (1, Cp)        conv bias, f32
    o_ref : (TB, Cp)       per-batch pooled output
    """
    # Single fused MXU matmul for all k conv taps, f32 accumulation.
    y = jnp.dot(x_ref[...], w_ref[...], preferred_element_type=jnp.float32)
    c = y.shape[-1]
    y = y.reshape(tile_b, l_pad, c)            # split leading dim (Lp multiple of 8)
    m = jnp.max(y, axis=1)                     # global max pool over time
    # bias + ReLU commute with max -> apply once per (TB, C) instead of (TB*L, C)
    o_ref[...] = jnp.maximum(m + b_ref[...], 0.0).astype(o_ref.dtype)


def cnn_forward(x, w, b, *, pad=2, tile_b=None, compute_dtype=jnp.bfloat16):
    """Conv1d(stride=1, padding=pad, bias) + ReLU + global MaxPool1d.

    x : (B, C_in, L)        input (xreshaped in the PyTorch module)
    w : (C_out, C_in, k)    conv weight, PyTorch layout
    b : (C_out,)            conv bias
    returns (B, C_out, 1)   matching nn.MaxPool1d(kernel_size=L_out) output
    """
    B, C_in, L = x.shape
    C_out, C_in_w, k = w.shape
    assert C_in_w == C_in
    L_out = L + 2 * pad - k + 1
    assert L_out >= 1

    # ---- im2col: turn the k-tap conv into one matmul -------------------------
    xp = jnp.pad(x, ((0, 0), (0, 0), (pad, pad)))
    # windows: (B, C_in, L_out, k), win[b, ci, t, j] = xp[b, ci, t + j]
    win = jnp.stack([xp[:, :, j:j + L_out] for j in range(k)], axis=-1)
    x_col = win.transpose(0, 2, 1, 3).reshape(B, L_out, C_in * k)   # (B, L_out, K)
    w_flat = w.reshape(C_out, C_in * k).T                            # (K, C_out)

    # ---- pad to lane/sublane-friendly sizes ---------------------------------
    K = C_in * k
    Kp = _round_up(K, 128)          # contraction dim -> multiple of 128 (zero pad)
    Cp = _round_up(C_out, 128)      # output channels -> lane-dense
    Lp = _round_up(L_out, 8)        # time dim -> sublane aligned

    # Edge-replicate along time: duplicated windows can never change the max.
    x_col = jnp.pad(x_col, ((0, 0), (0, Lp - L_out), (0, 0)), mode="edge")

    # ---- pick batch tile (explicit tiling, not "whole array") ---------------
    if tile_b is None:
        tile_b = max(1, 512 // Lp)              # ~512 matmul rows per grid step
    if tile_b >= B:
        tile_b = B                              # single tile: block == full dim is legal
    else:
        tile_b = max(8, (tile_b // 8) * 8)      # multi-tile: keep sublane alignment
    B_pad = _round_up(B, tile_b)

    # zero-pad batch rows and contraction columns (numerically inert)
    x_col = jnp.pad(x_col, ((0, B_pad - B), (0, 0), (0, Kp - K)))
    x_flat = x_col.reshape(B_pad * Lp, Kp).astype(compute_dtype)     # bf16 operands
    w_p = jnp.pad(w_flat, ((0, Kp - K), (0, Cp - C_out))).astype(compute_dtype)
    b_p = jnp.pad(b, ((0, Cp - C_out),)).reshape(1, Cp).astype(jnp.float32)

    grid = (B_pad // tile_b,)

    in_item = jnp.dtype(compute_dtype).itemsize
    out_item = jnp.dtype(x.dtype).itemsize

    # VMEM budget (double-buffered x/out tiles + weights + f32 accumulator), with headroom.
    x_tile_bytes = tile_b * Lp * Kp * in_item
    o_tile_bytes = tile_b * Cp * out_item
    acc_bytes = tile_b * Lp * Cp * 4
    vmem_needed = (2 * (x_tile_bytes + o_tile_bytes)
                   + 2 * Kp * Cp * in_item + 2 * Cp * 4 + acc_bytes)
    vmem_limit = int(min(max(2 * vmem_needed, 16 << 20), 48 << 20))

    cost = pl.CostEstimate(
        flops=2 * B_pad * Lp * Kp * Cp,
        transcendentals=0,
        bytes_accessed=int(B_pad * Lp * Kp * in_item + Kp * Cp * in_item
                           + Cp * 4 + B_pad * Cp * out_item),
    )

    kernel = functools.partial(_cnn_kernel, tile_b=tile_b, l_pad=Lp)

    out = pl.pallas_call(
        kernel,
        out_shape=jax.ShapeDtypeStruct((B_pad, Cp), x.dtype),
        grid_spec=pltpu.PrefetchScalarGridSpec(
            num_scalar_prefetch=0,
            grid=grid,
            in_specs=[
                pl.BlockSpec((tile_b * Lp, Kp), lambda i: (i, 0)),
                # constant index_map -> weights/bias fetched once, not per step
                pl.BlockSpec((Kp, Cp), lambda i: (0, 0)),
                pl.BlockSpec((1, Cp), lambda i: (0, 0)),
            ],
            out_specs=pl.BlockSpec((tile_b, Cp), lambda i: (i, 0)),
        ),
        compiler_params=pltpu.CompilerParams(
            dimension_semantics=("parallel",),
            vmem_limit_bytes=vmem_limit),
        cost_estimate=cost,
    )(x_flat, w_p, b_p)

    # strip batch / channel padding; match PyTorch output shape (B, e_word, 1)
    return out[:B, :C_out].reshape(B, C_out, 1)


def _reference(x, w, b, *, pad=2):
    """Pure-JAX f32 reference of Conv1d(stride=1, padding=pad) + ReLU + global max pool."""
    B, C_in, L = x.shape
    C_out, _, k = w.shape
    L_out = L + 2 * pad - k + 1
    xp = jnp.pad(x, ((0, 0), (0, 0), (pad, pad)))
    y = jnp.zeros((B, C_out, L_out), dtype=jnp.float32)
    for j in range(k):
        y = y + jnp.einsum("oc,bcl->bol", w[:, :, j], xp[:, :, j:j + L_out])
    y = y + b[None, :, None]
    y = jnp.maximum(y, 0.0)
    return jnp.max(y, axis=-1, keepdims=True)


if __name__ == "__main__":
    # Module defaults: e_word=256, e_char=50, k=5, padding=2.
    e_word, e_char, k = 256, 50, 5
    batch, m_word = 2, 16

    key = jax.random.PRNGKey(0)
    kx, kw, kb = jax.random.split(key, 3)

    x = jax.random.normal(kx, (batch, e_char, m_word), dtype=jnp.float32)

    fan_in = e_char * k
    bound = float(1.0 / (fan_in ** 0.5))   # PyTorch Conv1d default init bound
    w = jax.random.uniform(kw, (e_word, e_char, k),
                           minval=-bound, maxval=bound, dtype=jnp.float32)
    b = jax.random.uniform(kb, (e_word,),
                           minval=-bound, maxval=bound, dtype=jnp.float32)

    out = cnn_forward(x, w, b, pad=2)
    out = jax.block_until_ready(out)
    assert out.shape == (batch, e_word, 1)

    # Tight check: same bf16-rounded operands the kernel consumes, f32 math.
    xq = x.astype(jnp.bfloat16).astype(jnp.float32)
    wq = w.astype(jnp.bfloat16).astype(jnp.float32)
    ref_q = _reference(xq, wq, b, pad=2)
    assert jnp.allclose(out, ref_q, atol=1e-3, rtol=1e-3), "mismatch vs bf16-consistent reference"

    # Loose check against the full-precision reference (bf16 operand rounding only).
    ref32 = _reference(x, w, b, pad=2)
    assert jnp.allclose(out, ref32, atol=5e-2, rtol=5e-2), "mismatch vs f32 reference"

    print("KERNEL_OK")
</pallas_src>

<mosaic_0001>
module attributes {stable_mosaic.version = 11 : i64} {
  func.func @_cnn_kernel(%arg0: i32, %arg1: memref<32x256xbf16, #tpu.memory_space<vmem>>, %arg2: memref<256x256xbf16, #tpu.memory_space<vmem>>, %arg3: memref<1x256xf32, #tpu.memory_space<vmem>>, %arg4: memref<2x256xf32, #tpu.memory_space<vmem>>) attributes {dimension_semantics = [#tpu.dimension_semantics<parallel>], iteration_bounds = array<i64: 1>, scalar_prefetch = 0 : i64, scratch_operands = 0 : i64, tpu.core_type = #tpu.core_type<tc>, window_params = [{transform_indices = @transform_0, window_bounds = array<i64: 32, 256>}, {pipeline_mode = #tpu.pipeline_mode<synchronous>, transform_indices = @transform_1, window_bounds = array<i64: 256, 256>}, {pipeline_mode = #tpu.pipeline_mode<synchronous>, transform_indices = @transform_2, window_bounds = array<i64: 1, 256>}, {transform_indices = @transform_3, window_bounds = array<i64: 2, 256>}]} {
    %c0 = arith.constant 0 : index
    %c0_0 = arith.constant 0 : index
    %0 = vector.load %arg1[%c0, %c0_0] : memref<32x256xbf16, #tpu.memory_space<vmem>>, vector<32x256xbf16>
    %c0_1 = arith.constant 0 : index
    %c0_2 = arith.constant 0 : index
    %1 = vector.load %arg2[%c0_1, %c0_2] : memref<256x256xbf16, #tpu.memory_space<vmem>>, vector<256x256xbf16>
    %cst = arith.constant dense<0.000000e+00> : vector<32x256xf32>
    %2 = tpu.matmul %0, %1, %cst {dimension_numbers = #tpu.dot_dimension_numbers<[1], [0], [0], [1], [0, 0, 1, 1], [], []>} : vector<32x256xbf16>, vector<256x256xbf16>, vector<32x256xf32> -> vector<32x256xf32>
    %3 = vector.shape_cast %2 : vector<32x256xf32> to vector<2x16x256xf32>
    %cst_3 = arith.constant dense<0xFF800000> : vector<2x256xf32>
    %4 = vector.multi_reduction <maximumf>, %3, %cst_3 [1] : vector<2x16x256xf32> to vector<2x256xf32>
    %c0_4 = arith.constant 0 : index
    %c0_5 = arith.constant 0 : index
    %5 = vector.load %arg3[%c0_4, %c0_5] : memref<1x256xf32, #tpu.memory_space<vmem>>, vector<1x256xf32>
    %6 = vector.broadcast %5 : vector<1x256xf32> to vector<2x256xf32>
    %7 = arith.addf %4, %6 : vector<2x256xf32>
    %cst_6 = arith.constant 0.000000e+00 : f32
    %8 = vector.broadcast %cst_6 : f32 to vector<2x256xf32>
    %9 = arith.maximumf %7, %8 : vector<2x256xf32>
    %c0_7 = arith.constant 0 : index
    %c0_8 = arith.constant 0 : index
    %10 = vector.load %arg4[%c0_7, %c0_8] : memref<2x256xf32, #tpu.memory_space<vmem>>, vector<2x256xf32>
    tpu.vector_store %arg4[%c0_7, %c0_8], %9 {strides = array<i32>} : memref<2x256xf32, #tpu.memory_space<vmem>>, vector<2x256xf32>,
    return
  }
  func.func @transform_0(%arg0: i32) -> (i32, i32) {
    %c0_i32 = arith.constant 0 : i32
    %c0_i32_0 = arith.constant 0 : i32
    return %arg0, %c0_i32 : i32, i32
  }
  func.func @transform_1(%arg0: i32) -> (i32, i32) {
    %c0_i32 = arith.constant 0 : i32
    %c0_i32_0 = arith.constant 0 : i32
    %c0_i32_1 = arith.constant 0 : i32
    return %c0_i32, %c0_i32_0 : i32, i32
  }
  func.func @transform_2(%arg0: i32) -> (i32, i32) {
    %c0_i32 = arith.constant 0 : i32
    %c0_i32_0 = arith.constant 0 : i32
    %c0_i32_1 = arith.constant 0 : i32
    return %c0_i32, %c0_i32_0 : i32, i32
  }
  func.func @transform_3(%arg0: i32) -> (i32, i32) {
    %c0_i32 = arith.constant 0 : i32
    %c0_i32_0 = arith.constant 0 : i32
    return %arg0, %c0_i32 : i32, i32
  }
}

</mosaic_0001>

<bundles_post_ra>
// kernel: tpu_custom_call.1
= control target key start
LH: loop header
LB: loop body
LE: loop exit
PB: predicated region body
PF: predicated region fallthrough
CT: control target
= control target key end

     0   :  { %8 = vsyncpa [#allocation3], 0  ;;  %s643_s0 = inlined_call_operand.hbm [shape: bf16[32,256], index: 0, kind: input, shape index: {}]   ;;  %s644_s1 = inlined_call_operand.hbm [shape: bf16[256,256], index: 1, kind: input, shape index: {}]   ;;  %s645_s2 = inlined_call_operand.vmem [shape: f32[1,256], index: 2, kind: input, shape index: {}]   ;;  %s646_s3 = inlined_call_operand.hbm [shape: f32[2,256], index: 3, kind: output, shape index: {}]  }
   0x1   :  { %9 = vsyncpa [#allocation6], 0 }
   0x2   :  { %10 = vsyncpa [#allocation4], 0  ;;  %s605_s12 = smov [#allocation2]  }
   0x3   :  { %s16_s13 = sshll.u32 %s605_s12, 4  ;;  %s17_s13 = int_to_ptr.vmem [resolvable:$true] %s16_s13 }
   0x4   :  { %s547_s14 = scalar_lea.vmem %s17_s13, 512  ;;  %p552_p1 = scmp.lt.s32.totalorder %s17_s13, %s17_s13 }
   0x5   :  { %p548_p0 = scmp.ne.s32.totalorder %s17_s13, %s547_s14  ;;  %p553_p2 = scmp.lt.s32.totalorder %s547_s14, %s547_s14 }
   0x7   :  { %p554_p3 = por %p553_p2, %p552_p1 }
   0x9   :  { %p555_p4 = pnand %p554_p3, %p548_p0 }
   0xb   :  { %558 = shalt.err (!%p555_p4)
}
   0xc   :  { %s606_s15 = smov 128   ;;  %s607_s16 = smov 8  }
   0xd   :  { %22 = dma.hbm_to_vmem [thread:$0]  %s643_s0, 512, %s17_s13, [#allocation3], %s606_s15, %s606_s15, %s607_s16  }
   0xe   :  { %s608_s19 = smov [#allocation5]  }
   0xf   :  { %s28_s20 = sshll.u32 %s608_s19, 4  ;;  %s29_s20 = int_to_ptr.vmem [resolvable:$true] %s28_s20 }
  0x10   :  { %s567_s21 = scalar_lea.vmem %s29_s20, 4096  ;;  %p572_p6 = scmp.lt.s32.totalorder %s29_s20, %s29_s20 }
  0x11   :  { %p568_p5 = scmp.ne.s32.totalorder %s29_s20, %s567_s21  ;;  %p573_p7 = scmp.lt.s32.totalorder %s567_s21, %s567_s21 }
  0x13   :  { %p574_p8 = por %p573_p7, %p572_p6 }
  0x15   :  { %p575_p9 = pnand %p574_p8, %p568_p5 }
  0x17   :  { %578 = shalt.err (!%p575_p9)
}
  0x18   :  { %34 = dma.hbm_to_vmem [thread:$0]  %s644_s1, 4096, %s29_s20, [#allocation6], %s606_s15, %s606_s15, %s607_s16  }
  0x19   :  { %599 = dma.done.wait [#allocation3], 512  }
  0x1a   :  { %600 = vsyncadd [#allocation3], 4294966784 }
  0x1b   :  { %601 = dma.done.wait [#allocation6], 4096  }
  0x1c   :  { %602 = vsyncadd [#allocation6], 4294963200  ;;  %v485_v0 = vld [vmem:[#allocation5 + $0x74] ss:$8 sps:$4 sm:$0xff]   ;;  %v487_v1 = vld [vmem:[#allocation5 + $0x70] ss:$8 sps:$4 sm:$0xff]   ;;  %v342_v40 = vlaneseq }
  0x1d   :  { %259 = vmatprep.subr.bf16.mxu0 %v485_v0  ;;  %447 = vmatprep.subr.bf16.mxu1 %v485_v0  ;;  %v488_v2 = vld [vmem:[#allocation5 + $0x64] ss:$8 sps:$4 sm:$0xff]   ;;  %v490_v3 = vld [vmem:[#allocation5 + $0x60] ss:$8 sps:$4 sm:$0xff]   ;;  %v491_v4 = vld [vmem:[#allocation5 + $0x54] ss:$8 sps:$4 sm:$0xff]  }
  0x1e   :  { %260 = vmatpush1.bf16.msra.mxu0 %v487_v1  ;;  %463 = vmatpush1.bf16.msra.mxu1 %v487_v1  ;;  %v493_v5 = vld [vmem:[#allocation5 + $0x50] ss:$8 sps:$4 sm:$0xff]   ;;  %v494_v6 = vld [vmem:[#allocation5 + $0x44] ss:$8 sps:$4 sm:$0xff]   ;;  %v496_v7 = vld [vmem:[#allocation5 + $0x40] ss:$8 sps:$4 sm:$0xff]  }
  0x1f   :  { %261 = vmatprep.subr.bf16.mxu0 %v488_v2  ;;  %448 = vmatprep.subr.bf16.mxu1 %v488_v2  ;;  %v497_v8 = vld [vmem:[#allocation5 + $0x34] ss:$8 sps:$4 sm:$0xff]   ;;  %v499_v9 = vld [vmem:[#allocation5 + $0x30] ss:$8 sps:$4 sm:$0xff]   ;;  %v500_v10 = vld [vmem:[#allocation5 + $0x24] ss:$8 sps:$4 sm:$0xff]  }
  0x20   :  { %v502_v11 = vld [vmem:[#allocation5 + $0x20] ss:$8 sps:$4 sm:$0xff]   ;;  %v503_v12 = vld [vmem:[#allocation5 + $0x14] ss:$8 sps:$4 sm:$0xff]   ;;  %v535_v13 = vld [vmem:[#allocation2 + $0x4] ss:$8 sps:$4 sm:$0xff]  }
  0x21   :  { %v505_v14 = vld [vmem:[#allocation5 + $0x10] ss:$8 sps:$4 sm:$0xff]   ;;  %v538_v15 = vld [vmem:[#allocation2 + $0x14] ss:$8 sps:$4 sm:$0xff]   ;;  %v506_v16 = vld [vmem:[#allocation5 + $0x4] ss:$8 sps:$4 sm:$0xff]   ;;  %291 = vmatprep.mubr.bf16.mxu0 %v535_v13 }
  0x22   :  { %262 = vmatpush1.bf16.msra.mxu0 %v490_v3  ;;  %464 = vmatpush1.bf16.msra.mxu1 %v490_v3  ;;  %v508_v17 = vld [vmem:[#allocation5] ss:$8 sps:$4 sm:$0xff]   ;;  %v509_v18 = vld [vmem:[#allocation5 + $0xf4] ss:$8 sps:$4 sm:$0xff]   ;;  %v511_v19 = vld [vmem:[#allocation5 + $0xf0] ss:$8 sps:$4 sm:$0xff]  }
  0x23   :  { %263 = vmatprep.subr.bf16.mxu0 %v491_v4  ;;  %449 = vmatprep.subr.bf16.mxu1 %v491_v4  ;;  %v512_v20 = vld [vmem:[#allocation5 + $0xe4] ss:$8 sps:$4 sm:$0xff]   ;;  %v514_v21 = vld [vmem:[#allocation5 + $0xe0] ss:$8 sps:$4 sm:$0xff]   ;;  %v515_v22 = vld [vmem:[#allocation5 + $0xd4] ss:$8 sps:$4 sm:$0xff]  }
  0x24   :  { %301 = vmatprep.mubr.bf16.mxu1 %v538_v15  ;;  %v517_v23 = vld [vmem:[#allocation5 + $0xd0] ss:$8 sps:$4 sm:$0xff]   ;;  %v518_v24 = vld [vmem:[#allocation5 + $0xc4] ss:$8 sps:$4 sm:$0xff]   ;;  %v520_v25 = vld [vmem:[#allocation5 + $0xc0] ss:$8 sps:$4 sm:$0xff]  }
  0x25   :  { %v521_v26 = vld [vmem:[#allocation5 + $0xb4] ss:$8 sps:$4 sm:$0xff]   ;;  %v523_v27 = vld [vmem:[#allocation5 + $0xb0] ss:$8 sps:$4 sm:$0xff]   ;;  %v524_v28 = vld [vmem:[#allocation5 + $0xa4] ss:$8 sps:$4 sm:$0xff]  }
  0x26   :  { %264 = vmatpush1.bf16.msra.mxu0 %v493_v5  ;;  %465 = vmatpush1.bf16.msra.mxu1 %v493_v5  ;;  %v526_v29 = vld [vmem:[#allocation5 + $0xa0] ss:$8 sps:$4 sm:$0xff]   ;;  %v527_v30 = vld [vmem:[#allocation5 + $0x94] ss:$8 sps:$4 sm:$0xff]   ;;  %v529_v31 = vld [vmem:[#allocation5 + $0x90] ss:$8 sps:$4 sm:$0xff]  }
  0x27   :  { %265 = vmatprep.subr.bf16.mxu0 %v494_v6  ;;  %450 = vmatprep.subr.bf16.mxu1 %v494_v6  ;;  %v530_v32 = vld [vmem:[#allocation5 + $0x84] ss:$8 sps:$4 sm:$0xff]   ;;  %v532_v33 = vld [vmem:[#allocation5 + $0x80] ss:$8 sps:$4 sm:$0xff]   ;;  %v536_v35 = vld [vmem:[#allocation2 + $0x10] ss:$8 sps:$4 sm:$0xff]  }
  0x28   :  { %v533_v34 = vld [vmem:[#allocation2] ss:$8 sps:$4 sm:$0xff]   ;;  %v343_v45 = vshrl.u32 %v342_v40, 7  ;;  %v609_v4 = vmov 1983009808   ;;  %vm385_vm0 = vcmask 1041409  }
  0x29   :  { %v340_v58 = vld [vmem:[%s645_s2] sm:$0x3]  ;;  %v366_v5 = vunpack.c.l.s4 %v609_v4  ;;  %vm387_vm1 = vcmask 1043459   ;;  %vm389_vm2 = vcmask 1045509   ;;  %s610_s2 = smov [#allocation7]   ;;  %vm391_vm3 = vcmask 1047559  }
  0x2a   :  { %266 = vmatpush1.bf16.msra.mxu0 %v496_v7  ;;  %466 = vmatpush1.bf16.msra.mxu1 %v496_v7  ;;  %v344_v56 = vsub.s32 0, %v343_v45  ;;  %v348_v62 = vsub.s32 1, %v343_v45  ;;  %s401_s24 = sshll.u32 %s610_s2, 4  ;;  %s402_s24 = int_to_ptr.vmem [resolvable:$true] %s401_s24 }
  0x2b   :  { %267 = vmatprep.subr.bf16.mxu0 %v497_v8  ;;  %451 = vmatprep.subr.bf16.mxu1 %v497_v8  ;;  %v367_v15 = vunpack.c.0.s8 %v366_v5  ;;  %s579_s25 = scalar_lea.vmem %s402_s24, 64  ;;  %p584_p11 = scmp.lt.s32.totalorder %s402_s24, %s402_s24 }
  0x2c   :  { %v345_v3 = vrot.slane %v340_v58, %v344_v56  ;;  %p580_p10 = scmp.ne.s32.totalorder %s402_s24, %s579_s25  ;;  %p585_p12 = scmp.lt.s32.totalorder %s579_s25, %s579_s25 }
  0x2e   :  { %268 = vmatpush1.bf16.msra.mxu0 %v499_v9  ;;  %467 = vmatpush1.bf16.msra.mxu1 %v499_v9  ;;  %p586_p13 = por %p585_p12, %p584_p11 }
  0x2f   :  { %269 = vmatprep.subr.bf16.mxu0 %v500_v10  ;;  %452 = vmatprep.subr.bf16.mxu1 %v500_v10  ;;  %v349_v10 = vrot.slane %v340_v58, %v348_v62 }
  0x30   :  { %p587_p0 = pnand %p586_p13, %p580_p10 }
  0x32   :  { %270 = vmatpush1.bf16.msra.mxu0 %v502_v11  ;;  %468 = vmatpush1.bf16.msra.mxu1 %v502_v11 }
  0x33   :  { %271 = vmatprep.subr.bf16.mxu0 %v503_v12  ;;  %453 = vmatprep.subr.bf16.mxu1 %v503_v12 }
  0x36   :  { %272 = vmatpush1.bf16.msra.mxu0 %v505_v14  ;;  %469 = vmatpush1.bf16.msra.mxu1 %v505_v14 }
  0x37   :  { %273 = vmatprep.subr.bf16.mxu0 %v506_v16  ;;  %454 = vmatprep.subr.bf16.mxu1 %v506_v16 }
  0x3a   :  { %274 = vmatpush1.bf16.msra.mxu0 %v508_v17  ;;  %470 = vmatpush1.bf16.msra.mxu1 %v508_v17 }
  0x3b   :  { %275 = vmatprep.subr.bf16.mxu0 %v509_v18  ;;  %455 = vmatprep.subr.bf16.mxu1 %v509_v18 }
  0x3e   :  { %276 = vmatpush2.bf16.msra.mxu0 %v511_v19  ;;  %471 = vmatpush2.bf16.msra.mxu1 %v511_v19 }
  0x3f   :  { %277 = vmatprep.subr.bf16.mxu0 %v512_v20  ;;  %456 = vmatprep.subr.bf16.mxu1 %v512_v20 }
  0x42   :  { %278 = vmatpush2.bf16.msra.mxu0 %v514_v21  ;;  %472 = vmatpush2.bf16.msra.mxu1 %v514_v21 }
  0x43   :  { %279 = vmatprep.subr.bf16.mxu0 %v515_v22  ;;  %457 = vmatprep.subr.bf16.mxu1 %v515_v22  ;;  %v370_v22 = vsub.s32 %v367_v15, %v343_v45 }
  0x46   :  { %280 = vmatpush2.bf16.msra.mxu0 %v517_v23  ;;  %473 = vmatpush2.bf16.msra.mxu1 %v517_v23 }
  0x47   :  { %281 = vmatprep.subr.bf16.mxu0 %v518_v24  ;;  %458 = vmatprep.subr.bf16.mxu1 %v518_v24 }
  0x4a   :  { %282 = vmatpush2.bf16.msra.mxu0 %v520_v25  ;;  %474 = vmatpush2.bf16.msra.mxu1 %v520_v25 }
  0x4b   :  { %283 = vmatprep.subr.bf16.mxu0 %v521_v26  ;;  %459 = vmatprep.subr.bf16.mxu1 %v521_v26 }
  0x4e   :  { %284 = vmatpush2.bf16.msra.mxu0 %v523_v27  ;;  %475 = vmatpush2.bf16.msra.mxu1 %v523_v27 }
  0x4f   :  { %285 = vmatprep.subr.bf16.mxu0 %v524_v28  ;;  %460 = vmatprep.subr.bf16.mxu1 %v524_v28 }
  0x52   :  { %286 = vmatpush2.bf16.msra.mxu0 %v526_v29  ;;  %476 = vmatpush2.bf16.msra.mxu1 %v526_v29 }
  0x53   :  { %287 = vmatprep.subr.bf16.mxu0 %v527_v30  ;;  %461 = vmatprep.subr.bf16.mxu1 %v527_v30 }
  0x56   :  { %288 = vmatpush2.bf16.msra.mxu0 %v529_v31  ;;  %477 = vmatpush2.bf16.msra.mxu1 %v529_v31 }
  0x57   :  { %289 = vmatprep.subr.bf16.mxu0 %v530_v32  ;;  %462 = vmatprep.subr.bf16.mxu1 %v530_v32 }
  0x5a   :  { %290 = vmatpush2.bf16.msra.mxu0 %v532_v33  ;;  %478 = vmatpush2.bf16.msra.mxu1 %v532_v33 }
  0x5d   :  { %292 = vmatmul.mubr.bf16.vlgmr.msra.gmra.mxu0 %v533_v34  ;;  %302 = vmatmul.mubr.bf16.vlgmr.msra.gmra.mxu1 %v536_v35 }
 0x11d   :  { %v293_v36 = vpop.f32.mrf.mxu0  ;;  %v303_v37 = vpop.f32.mrf.mxu1 }
 0x11f   :  { %v295_v38 = vpop.f32.mrf.mxu0  ;;  %v305_v39 = vpop.f32.mrf.mxu1 }
 0x121   :  { %v297_v41 = vpop.f32.mrf.mxu0  ;;  %v307_v42 = vpop.f32.mrf.mxu1 }
 0x122   :  { %v312_v43 = vmax.f32 %v293_v36, %v297_v41  ;;  %v326_v44 = vmax.f32 %v303_v37, %v307_v42 }
 0x123   :  { %v299_v46 = vpop.f32.mrf.mxu0  ;;  %v309_v47 = vpop.f32.mrf.mxu1 }
 0x124   :  { %v313_v48 = vrot.slane %v312_v43, 4  ;;  %v327_v49 = vrot.slane %v326_v44, 4  ;;  %v319_v50 = vmax.f32 %v295_v38, %v299_v46  ;;  %v333_v51 = vmax.f32 %v305_v39, %v309_v47 }
 0x126   :  { %v314_v52 = vmax.f32 %v312_v43, %v313_v48  ;;  %v328_v53 = vmax.f32 %v326_v44, %v327_v49  ;;  %v320_v54 = vrot.slane %v319_v50, 4  ;;  %v334_v55 = vrot.slane %v333_v51, 4 }
 0x128   :  { %v315_v57 = vrot.slane %v314_v52, 2  ;;  %v329_v59 = vrot.slane %v328_v53, 2  ;;  %v321_v60 = vmax.f32 %v319_v50, %v320_v54  ;;  %v335_v61 = vmax.f32 %v333_v51, %v334_v55 }
 0x12a   :  { %v316_v63 = vmax.f32 %v314_v52, %v315_v57  ;;  %v330_v0 = vmax.f32 %v328_v53, %v329_v59  ;;  %v322_v1 = vrot.slane %v321_v60, 2  ;;  %v336_v2 = vrot.slane %v335_v61, 2 }
 0x12c   :  { %v317_v6 = vrot.slane %v316_v63, 1  ;;  %v331_v7 = vrot.slane %v330_v0, 1  ;;  %v323_v8 = vmax.f32 %v321_v60, %v322_v1  ;;  %v337_v9 = vmax.f32 %v335_v61, %v336_v2 }
 0x12e   :  { %v318_v11 = vmax.f32 %v316_v63, %v317_v6  ;;  %v332_v12 = vmax.f32 %v330_v0, %v331_v7  ;;  %v324_v13 = vrot.slane %v323_v8, 1  ;;  %v338_v14 = vrot.slane %v337_v9, 1 }
 0x130   :  { %v352_v16 = vadd.f32 %v345_v3, %v318_v11  ;;  %v354_v17 = vadd.f32 %v345_v3, %v332_v12  ;;  %v325_v18 = vmax.f32 %v323_v8, %v324_v13  ;;  %v339_v19 = vmax.f32 %v337_v9, %v338_v14 }
 0x132   :  { %v353_v20 = vadd.f32 %v349_v10, %v325_v18  ;;  %v355_v21 = vadd.f32 %v349_v10, %v339_v19  ;;  %v356_v23 = vmax.f32 %v352_v16, 0.0  ;;  %v358_v24 = vmax.f32 %v354_v17, 0.0 }
 0x134   :  { %v357_v25 = vmax.f32 %v353_v20, 0.0  ;;  %v359_v26 = vmax.f32 %v355_v21, 0.0 }
 0x136   :  { %v364_v27 = vcombine.low %v356_v23, %v357_v25  ;;  %v372_v28 = vcombine.low %v358_v24, %v359_v26 }
 0x138   :  { %v379_v29 = vrot.slane %v372_v28, %v370_v22  ;;  %v371_v30 = vrot.slane %v364_v27, %v370_v22 }
 0x13a   :  { %v384_v31 = vrot.slane %v379_v29, 7 }
 0x13c   :  { %v386_v32 = vsel %vm385_vm0, %v384_v31, %v371_v30 }
 0x13d   :  { %v388_v33 = vsel %vm387_vm1, %v384_v31, %v386_v32 }
 0x13e   :  { %v390_v34 = vsel %vm389_vm2, %v384_v31, %v388_v33 }
 0x13f   :  { %v392_v35 = vsel %vm391_vm3, %v384_v31, %v390_v34 }
 0x140   :  { %394 = vst [vmem:[#allocation7] sm:$0xf] %v392_v35 }
 0x141   :  { %590 = shalt.err (!%p587_p0)
}
 0x142   :  { %404 = dma.vmem_to_hbm [thread:$0]  %s402_s24, 64, %s646_s3, [#allocation4]  }
 0x143   :  { %603 = dma.done.wait [#allocation4], 64  }
 0x144   :  { %604 = vsyncadd [#allocation4], 4294967232 }
 0x145   :  { %408 = vsyncpa [#allocation3], 1 }
 0x146   :  { %409 = vsyncpa [#allocation6], 1 }
 0x147   :  { %410 = vsyncpa [#allocation4], 1 }

</bundles_post_ra>
